<compile_context>
chip_gen: v5e
topology: v5e:2x2
jax: 0.10.0
libtpu: 0.0.40
codegen_flags: <defaults>
</compile_context>

<pallas_src>
import functools
import math

import jax
import jax.numpy as jnp
from jax.experimental import pallas as pl
from jax.experimental.pallas import tpu as pltpu


# ----------------------------------------------------------------------------
# Fused kernel: one (batch element, query tile) per grid step
# ----------------------------------------------------------------------------
def fused_attention_kernel(q_ref, k_ref, v_ref,
                           wq_ref, bq_ref, wk_ref, bk_ref, wv_ref, bv_ref,
                           wo_ref, bo_ref, o_ref,
                           kp_scr, vp_scr, qp_scr, o_scr,
                           *, num_heads, c_per_head, scale, compute_dtype,
                           cache_kv):
    f32 = jnp.float32

    # ---- K/V projections (QLinear, quant=False): x @ W^T + b ----------------
    # Cached in VMEM scratch across query tiles of the same batch element:
    # only recomputed when the query-tile index is 0 (the k/v input blocks are
    # indexed by batch only, so Pallas re-DMAs them once per batch element).
    def project_kv():
        kp_scr[...] = (jnp.dot(k_ref[0], wk_ref[...],
                               preferred_element_type=f32)
                       + bk_ref[...]).astype(compute_dtype)
        vp_scr[...] = (jnp.dot(v_ref[0], wv_ref[...],
                               preferred_element_type=f32)
                       + bv_ref[...]).astype(compute_dtype)

    if cache_kv:
        @pl.when(pl.program_id(1) == 0)
        def _():
            project_kv()
    else:
        project_kv()

    # ---- Q projection for this query tile; fold 1/sqrt(Ch) into q -----------
    # (scaling the (TQ, internal) projection is ~Nk/Ch fewer VPU multiplies
    #  than scaling every (TQ, Nk) score tile).
    qp = jnp.dot(q_ref[0], wq_ref[...], preferred_element_type=f32) + bq_ref[...]
    qp_scr[...] = (qp * scale).astype(compute_dtype)

    # ---- per-head attention --------------------------------------------------
    # Static ref slices per head (one bf16 cast already happened at the scratch
    # store); each head's result is stored straight into the lane-dense output
    # slab, ending the (TQ, Nk) f32 temporaries' live ranges at the store.
    # TODO(synk): for very long Nk (v7x, 64 MiB VMEM) stream K/V with an
    # online-softmax inner loop instead of materializing one (TQ, Nk) tile.
    for h in range(num_heads):
        lo = h * c_per_head
        hi = lo + c_per_head
        qh = qp_scr[:, lo:hi]                          # (TQ, Ch) bf16
        kh = kp_scr[:, lo:hi]                          # (Nk, Ch) bf16
        vh = vp_scr[:, lo:hi]                          # (Nk, Ch) bf16

        # scores: contract the channel dim of both operands (no K transpose).
        s = jax.lax.dot_general(qh, kh, (((1,), (1,)), ((), ())),
                                preferred_element_type=f32)   # (TQ, Nk)

        # softmax over keys (QIntSoftmax with quant=False == plain softmax);
        # denominator reciprocal goes to the otherwise-idle EUP.
        m = jnp.max(s, axis=-1, keepdims=True)
        e = jnp.exp(s - m)
        p = e * pl.reciprocal(jnp.sum(e, axis=-1, keepdims=True), approx=True)

        o_scr[:, lo:hi] = jnp.dot(p.astype(compute_dtype), vh,
                                  preferred_element_type=f32
                                  ).astype(compute_dtype)

    # ---- output projection on the full-width, lane-dense slab ---------------
    out = jnp.dot(o_scr[...], wo_ref[...], preferred_element_type=f32) + bo_ref[...]
    o_ref[0] = out.astype(o_ref.dtype)


# ----------------------------------------------------------------------------
# Wrapper
# ----------------------------------------------------------------------------
def attention_forward(q, k, v, params, num_heads, *,
                      q_tile=None, compute_dtype=jnp.bfloat16,
                      out_dtype=None, vmem_limit_bytes=48 * 1024 * 1024,
                      split_q_across_cores=False):
    """Reproduces Attention.forward (quant=False).

    q: (B, Nq, E), k/v: (B, Nk, E).  Returns (B, Nq, E) in `out_dtype`
    (defaults to q.dtype; pass jnp.bfloat16 on mem-bound parts like v5e).
    """
    B, Nq, E = q.shape
    Nk = k.shape[1]
    internal_dim = params["wq"].shape[0]
    assert internal_dim % num_heads == 0, "num_heads must divide internal_dim"
    c_per_head = internal_dim // num_heads
    scale = 1.0 / math.sqrt(c_per_head)
    out_dtype = q.dtype if out_dtype is None else out_dtype

    # Inputs pre-cast to bf16: halves the HBM bytes streamed per grid step.
    q_c = q.astype(compute_dtype)
    k_c = k.astype(compute_dtype)
    v_c = v.astype(compute_dtype)

    # PyTorch (out_features, in_features) -> (in, out); weights pre-cast bf16,
    # biases stay f32 (added after f32 MXU accumulation).
    wq_t = jnp.transpose(params["wq"]).astype(compute_dtype)
    wk_t = jnp.transpose(params["wk"]).astype(compute_dtype)
    wv_t = jnp.transpose(params["wv"]).astype(compute_dtype)
    wo_t = jnp.transpose(params["wo"]).astype(compute_dtype)
    bq = params["bq"].reshape(1, internal_dim).astype(jnp.float32)
    bk = params["bk"].reshape(1, internal_dim).astype(jnp.float32)
    bv = params["bv"].reshape(1, internal_dim).astype(jnp.float32)
    bo = params["bo"].reshape(1, E).astype(jnp.float32)

    # Lane-dense output stores: pad the output feature dim to a multiple of
    # 128 (zero-padded Wo columns / bo entries), slice back outside the kernel.
    lane_pad = (-E) % 128
    E_out = E + lane_pad
    if lane_pad:
        wo_t = jnp.pad(wo_t, ((0, 0), (0, lane_pad)))
        bo = jnp.pad(bo, ((0, 0), (0, lane_pad)))

    # Query-token tiling: bounds VMEM (one (TQ, Nk) f32 score tile per head at
    # a time) and gives a second grid axis at large Nq.
    if q_tile is None:
        q_tile = Nq if Nq <= 512 else 512             # multiple of 8 for large Nq
    q_tile = min(q_tile, Nq)
    n_q_tiles = pl.cdiv(Nq, q_tile)

    # K/V-projection caching needs the q-tile axis sequential ("arbitrary").
    # For B==1 on a 2-TC part (v7x) the caller can instead split query tiles
    # across cores and accept recomputing kp/vp once per tile.
    if split_q_across_cores and B == 1 and n_q_tiles > 1:
        dim_sems = ("arbitrary", "parallel")
        cache_kv = False
    else:
        dim_sems = ("parallel", "arbitrary")
        cache_kv = True

    kernel = functools.partial(
        fused_attention_kernel,
        num_heads=num_heads, c_per_head=c_per_head, scale=scale,
        compute_dtype=compute_dtype, cache_kv=cache_kv)

    full = lambda b, t: (0, 0)                        # weights/biases: untiled
    out_padded = pl.pallas_call(
        kernel,
        out_shape=jax.ShapeDtypeStruct((B, Nq, E_out), out_dtype),
        grid=(B, n_q_tiles),
        in_specs=[
            pl.BlockSpec((1, q_tile, E), lambda b, t: (b, t, 0)),   # q tile
            pl.BlockSpec((1, Nk, E), lambda b, t: (b, 0, 0)),       # k rows
            pl.BlockSpec((1, Nk, E), lambda b, t: (b, 0, 0)),       # v rows
            pl.BlockSpec((E, internal_dim), full),                  # Wq^T
            pl.BlockSpec((1, internal_dim), full),                  # bq
            pl.BlockSpec((E, internal_dim), full),                  # Wk^T
            pl.BlockSpec((1, internal_dim), full),                  # bk
            pl.BlockSpec((E, internal_dim), full),                  # Wv^T
            pl.BlockSpec((1, internal_dim), full),                  # bv
            pl.BlockSpec((internal_dim, E_out), full),              # Wo^T (padded)
            pl.BlockSpec((1, E_out), full),                         # bo   (padded)
        ],
        out_specs=pl.BlockSpec((1, q_tile, E_out), lambda b, t: (b, t, 0)),
        scratch_shapes=[
            pltpu.VMEM((Nk, internal_dim), compute_dtype),          # kp cache
            pltpu.VMEM((Nk, internal_dim), compute_dtype),          # vp cache
            pltpu.VMEM((q_tile, internal_dim), compute_dtype),      # scaled qp
            pltpu.VMEM((q_tile, internal_dim), compute_dtype),      # head slab
        ],
        compiler_params=pltpu.CompilerParams(
            dimension_semantics=dim_sems,
            vmem_limit_bytes=vmem_limit_bytes),
    )(q_c, k_c, v_c, wq_t, bq, wk_t, bk, wv_t, bv, wo_t, bo)

    return out_padded[:, :, :E] if lane_pad else out_padded


# ----------------------------------------------------------------------------
# Deterministic parameter init + pure-JAX references + driver
# ----------------------------------------------------------------------------
def init_params(key, embedding_dim, internal_dim):
    ks = jax.random.split(key, 8)

    def lin_init(kw, kb, fan_out, fan_in):
        bound = 1.0 / math.sqrt(fan_in)
        w = jax.random.uniform(kw, (fan_out, fan_in), jnp.float32, -bound, bound)
        b = jax.random.uniform(kb, (fan_out,), jnp.float32, -bound, bound)
        return w, b

    wq, bq = lin_init(ks[0], ks[1], internal_dim, embedding_dim)
    wk, bk = lin_init(ks[2], ks[3], internal_dim, embedding_dim)
    wv, bv = lin_init(ks[4], ks[5], internal_dim, embedding_dim)
    wo, bo = lin_init(ks[6], ks[7], embedding_dim, internal_dim)
    return dict(wq=wq, bq=bq, wk=wk, bk=bk, wv=wv, bv=bv, wo=wo, bo=bo)


def reference_forward(q, k, v, params, num_heads, *, mixed=False):
    """Pure-JAX reference.  mixed=True mirrors the kernel's mixed precision
    (bf16 operands, f32 accumulation, scale folded into the q projection)."""
    f32 = jnp.float32
    B, Nq, E = q.shape
    internal_dim = params["wq"].shape[0]
    ch = internal_dim // num_heads
    scale = 1.0 / math.sqrt(ch)
    cast = (lambda x: x.astype(jnp.bfloat16)) if mixed else (lambda x: x.astype(f32))

    def mm(a, b):
        return jnp.matmul(cast(a), cast(b), preferred_element_type=f32)

    qp = (mm(q, params["wq"].T) + params["bq"]) * scale
    kp = mm(k, params["wk"].T) + params["bk"]
    vp = mm(v, params["wv"].T) + params["bv"]

    def sep(x):
        b, n, c = x.shape
        return cast(x).reshape(b, n, num_heads, ch).transpose(0, 2, 1, 3)

    qh, kh, vh = sep(qp), sep(kp), sep(vp)
    s = jnp.einsum("bhqc,bhkc->bhqk", qh, kh, preferred_element_type=f32)
    p = jax.nn.softmax(s, axis=-1)
    o = jnp.einsum("bhqk,bhkc->bhqc", cast(p), vh, preferred_element_type=f32)
    o = o.transpose(0, 2, 1, 3).reshape(B, Nq, internal_dim)
    return mm(o, params["wo"].T) + params["bo"]


def _run_and_check(q, k, v, params, num_heads, **kwargs):
    out = attention_forward(q, k, v, params, num_heads, **kwargs)
    out = jax.block_until_ready(out)
    E = params["wo"].shape[0]
    assert out.shape == (q.shape[0], q.shape[1], E)

    # Implementation check: reference matching the kernel's mixed precision
    # (remaining deltas: approx reciprocal, f32 reduction order).
    ref_mixed = reference_forward(q, k, v, params, num_heads, mixed=True)
    assert jnp.allclose(out, ref_mixed, atol=5e-3, rtol=5e-3), \
        "mismatch vs mixed-precision-matched reference"

    # Semantic check: full-f32 reference; tolerance covers bf16 rounding.
    ref_f32 = reference_forward(q, k, v, params, num_heads, mixed=False)
    assert jnp.allclose(out, ref_f32, atol=5e-2, rtol=5e-2), \
        "mismatch vs f32 reference"
    return out


if __name__ == "__main__":
    # Shapes consistent with the module: embedding_dim=32, num_heads=4,
    # downsample_rate=1.
    embedding_dim = 32
    num_heads = 4
    downsample_rate = 1
    internal_dim = embedding_dim // downsample_rate

    key = jax.random.PRNGKey(0)
    kq, kk, kv, kp, kq2, kk2, kv2 = jax.random.split(key, 7)
    params = init_params(kp, embedding_dim, internal_dim)

    # --- Test 1: batch=2, 8 query tokens, 8 key/value tokens (single q tile).
    B, Nq, Nk = 2, 8, 8
    q = jax.random.normal(kq, (B, Nq, embedding_dim), jnp.float32)
    k = jax.random.normal(kk, (B, Nk, embedding_dim), jnp.float32)
    v = jax.random.normal(kv, (B, Nk, embedding_dim), jnp.float32)
    _run_and_check(q, k, v, params, num_heads)

    # --- Test 2: exercises partial query tiles (Nq % q_tile != 0) and the
    #     cached-K/V-projection path (multiple q tiles per batch element).
    B2, Nq2, Nk2 = 1, 20, 24
    q2 = jax.random.normal(kq2, (B2, Nq2, embedding_dim), jnp.float32)
    k2 = jax.random.normal(kk2, (B2, Nk2, embedding_dim), jnp.float32)
    v2 = jax.random.normal(kv2, (B2, Nk2, embedding_dim), jnp.float32)
    _run_and_check(q2, k2, v2, params, num_heads, q_tile=8)

    print("KERNEL_OK")
</pallas_src>

<mosaic_0001>
module attributes {stable_mosaic.version = 11 : i64} {
  func.func @fused_attention_kernel(%arg0: i32, %arg1: i32, %arg2: memref<1x8x32xbf16, #tpu.memory_space<vmem>>, %arg3: memref<1x8x32xbf16, #tpu.memory_space<vmem>>, %arg4: memref<1x8x32xbf16, #tpu.memory_space<vmem>>, %arg5: memref<32x32xbf16, #tpu.memory_space<vmem>>, %arg6: memref<1x32xf32, #tpu.memory_space<vmem>>, %arg7: memref<32x32xbf16, #tpu.memory_space<vmem>>, %arg8: memref<1x32xf32, #tpu.memory_space<vmem>>, %arg9: memref<32x32xbf16, #tpu.memory_space<vmem>>, %arg10: memref<1x32xf32, #tpu.memory_space<vmem>>, %arg11: memref<32x128xbf16, #tpu.memory_space<vmem>>, %arg12: memref<1x128xf32, #tpu.memory_space<vmem>>, %arg13: memref<1x8x128xf32, #tpu.memory_space<vmem>>, %arg14: memref<8x32xbf16, #tpu.memory_space<vmem>>, %arg15: memref<8x32xbf16, #tpu.memory_space<vmem>>, %arg16: memref<8x32xbf16, #tpu.memory_space<vmem>>, %arg17: memref<8x32xbf16, #tpu.memory_space<vmem>>) attributes {dimension_semantics = [#tpu.dimension_semantics<parallel>, #tpu.dimension_semantics<arbitrary>], iteration_bounds = array<i64: 2, 1>, scalar_prefetch = 0 : i64, scratch_operands = 4 : i64, tpu.core_type = #tpu.core_type<tc>, window_params = [{transform_indices = @transform_0, window_bounds = array<i64: 1, 8, 32>}, {transform_indices = @transform_1, window_bounds = array<i64: 1, 8, 32>}, {transform_indices = @transform_2, window_bounds = array<i64: 1, 8, 32>}, {pipeline_mode = #tpu.pipeline_mode<synchronous>, transform_indices = @transform_3, window_bounds = array<i64: 32, 32>}, {pipeline_mode = #tpu.pipeline_mode<synchronous>, transform_indices = @transform_4, window_bounds = array<i64: 1, 32>}, {pipeline_mode = #tpu.pipeline_mode<synchronous>, transform_indices = @transform_5, window_bounds = array<i64: 32, 32>}, {pipeline_mode = #tpu.pipeline_mode<synchronous>, transform_indices = @transform_6, window_bounds = array<i64: 1, 32>}, {pipeline_mode = #tpu.pipeline_mode<synchronous>, transform_indices = @transform_7, window_bounds = array<i64: 32, 32>}, {pipeline_mode = #tpu.pipeline_mode<synchronous>, transform_indices = @transform_8, window_bounds = array<i64: 1, 32>}, {pipeline_mode = #tpu.pipeline_mode<synchronous>, transform_indices = @transform_9, window_bounds = array<i64: 32, 128>}, {pipeline_mode = #tpu.pipeline_mode<synchronous>, transform_indices = @transform_10, window_bounds = array<i64: 1, 128>}, {transform_indices = @transform_11, window_bounds = array<i64: 1, 8, 128>}]} {
    %c0_i32 = arith.constant 0 : i32
    %0 = arith.cmpi eq, %arg1, %c0_i32 : i32
    %1 = arith.extui %0 : i1 to i32
    %c0_i32_0 = arith.constant 0 : i32
    %2 = arith.cmpi ne, %1, %c0_i32_0 : i32
    scf.if %2 {
      %c0_65 = arith.constant 0 : index
      %c0_66 = arith.constant 0 : index
      %c0_67 = arith.constant 0 : index
      %95 = vector.load %arg3[%c0_65, %c0_66, %c0_67] : memref<1x8x32xbf16, #tpu.memory_space<vmem>>, vector<1x8x32xbf16>
      %96 = vector.shape_cast %95 : vector<1x8x32xbf16> to vector<8x32xbf16>
      %c0_68 = arith.constant 0 : index
      %c0_69 = arith.constant 0 : index
      %97 = vector.load %arg7[%c0_68, %c0_69] : memref<32x32xbf16, #tpu.memory_space<vmem>>, vector<32x32xbf16>
      %cst_70 = arith.constant dense<0.000000e+00> : vector<8x32xf32>
      %98 = tpu.matmul %96, %97, %cst_70 {dimension_numbers = #tpu.dot_dimension_numbers<[1], [0], [0], [1], [0, 0, 1, 1], [], []>} : vector<8x32xbf16>, vector<32x32xbf16>, vector<8x32xf32> -> vector<8x32xf32>
      %c0_71 = arith.constant 0 : index
      %c0_72 = arith.constant 0 : index
      %99 = vector.load %arg8[%c0_71, %c0_72] : memref<1x32xf32, #tpu.memory_space<vmem>>, vector<1x32xf32>
      %100 = vector.broadcast %99 : vector<1x32xf32> to vector<8x32xf32>
      %101 = arith.addf %98, %100 : vector<8x32xf32>
      %102 = arith.truncf %101 : vector<8x32xf32> to vector<8x32xbf16>
      %c0_73 = arith.constant 0 : index
      %c0_74 = arith.constant 0 : index
      %103 = vector.load %arg14[%c0_73, %c0_74] : memref<8x32xbf16, #tpu.memory_space<vmem>>, vector<8x32xbf16>
      tpu.vector_store %arg14[%c0_73, %c0_74], %102 {strides = array<i32>} : memref<8x32xbf16, #tpu.memory_space<vmem>>, vector<8x32xbf16>,
      %c0_75 = arith.constant 0 : index
      %c0_76 = arith.constant 0 : index
      %c0_77 = arith.constant 0 : index
      %104 = vector.load %arg4[%c0_75, %c0_76, %c0_77] : memref<1x8x32xbf16, #tpu.memory_space<vmem>>, vector<1x8x32xbf16>
      %105 = vector.shape_cast %104 : vector<1x8x32xbf16> to vector<8x32xbf16>
      %c0_78 = arith.constant 0 : index
      %c0_79 = arith.constant 0 : index
      %106 = vector.load %arg9[%c0_78, %c0_79] : memref<32x32xbf16, #tpu.memory_space<vmem>>, vector<32x32xbf16>
      %cst_80 = arith.constant dense<0.000000e+00> : vector<8x32xf32>
      %107 = tpu.matmul %105, %106, %cst_80 {dimension_numbers = #tpu.dot_dimension_numbers<[1], [0], [0], [1], [0, 0, 1, 1], [], []>} : vector<8x32xbf16>, vector<32x32xbf16>, vector<8x32xf32> -> vector<8x32xf32>
      %c0_81 = arith.constant 0 : index
      %c0_82 = arith.constant 0 : index
      %108 = vector.load %arg10[%c0_81, %c0_82] : memref<1x32xf32, #tpu.memory_space<vmem>>, vector<1x32xf32>
      %109 = vector.broadcast %108 : vector<1x32xf32> to vector<8x32xf32>
      %110 = arith.addf %107, %109 : vector<8x32xf32>
      %111 = arith.truncf %110 : vector<8x32xf32> to vector<8x32xbf16>
      %c0_83 = arith.constant 0 : index
      %c0_84 = arith.constant 0 : index
      %112 = vector.load %arg15[%c0_83, %c0_84] : memref<8x32xbf16, #tpu.memory_space<vmem>>, vector<8x32xbf16>
      tpu.vector_store %arg15[%c0_83, %c0_84], %111 {strides = array<i32>} : memref<8x32xbf16, #tpu.memory_space<vmem>>, vector<8x32xbf16>,
    } else {
    }
    %c0 = arith.constant 0 : index
    %c0_1 = arith.constant 0 : index
    %c0_2 = arith.constant 0 : index
    %3 = vector.load %arg2[%c0, %c0_1, %c0_2] : memref<1x8x32xbf16, #tpu.memory_space<vmem>>, vector<1x8x32xbf16>
    %4 = vector.shape_cast %3 : vector<1x8x32xbf16> to vector<8x32xbf16>
    %c0_3 = arith.constant 0 : index
    %c0_4 = arith.constant 0 : index
    %5 = vector.load %arg5[%c0_3, %c0_4] : memref<32x32xbf16, #tpu.memory_space<vmem>>, vector<32x32xbf16>
    %cst = arith.constant dense<0.000000e+00> : vector<8x32xf32>
    %6 = tpu.matmul %4, %5, %cst {dimension_numbers = #tpu.dot_dimension_numbers<[1], [0], [0], [1], [0, 0, 1, 1], [], []>} : vector<8x32xbf16>, vector<32x32xbf16>, vector<8x32xf32> -> vector<8x32xf32>
    %c0_5 = arith.constant 0 : index
    %c0_6 = arith.constant 0 : index
    %7 = vector.load %arg6[%c0_5, %c0_6] : memref<1x32xf32, #tpu.memory_space<vmem>>, vector<1x32xf32>
    %8 = vector.broadcast %7 : vector<1x32xf32> to vector<8x32xf32>
    %9 = arith.addf %6, %8 : vector<8x32xf32>
    %cst_7 = arith.constant 0.353553385 : f32
    %10 = vector.broadcast %cst_7 : f32 to vector<8x32xf32>
    %11 = arith.mulf %9, %10 : vector<8x32xf32>
    %12 = arith.truncf %11 : vector<8x32xf32> to vector<8x32xbf16>
    %c0_8 = arith.constant 0 : index
    %c0_9 = arith.constant 0 : index
    %13 = vector.load %arg16[%c0_8, %c0_9] : memref<8x32xbf16, #tpu.memory_space<vmem>>, vector<8x32xbf16>
    tpu.vector_store %arg16[%c0_8, %c0_9], %12 {strides = array<i32>} : memref<8x32xbf16, #tpu.memory_space<vmem>>, vector<8x32xbf16>,
    %c0_10 = arith.constant 0 : index
    %c0_11 = arith.constant 0 : index
    %14 = vector.load %arg16[%c0_10, %c0_11] : memref<8x32xbf16, #tpu.memory_space<vmem>>, vector<8x8xbf16>
    %c0_12 = arith.constant 0 : index
    %c0_13 = arith.constant 0 : index
    %15 = vector.load %arg14[%c0_12, %c0_13] : memref<8x32xbf16, #tpu.memory_space<vmem>>, vector<8x8xbf16>
    %c0_14 = arith.constant 0 : index
    %c0_15 = arith.constant 0 : index
    %16 = vector.load %arg15[%c0_14, %c0_15] : memref<8x32xbf16, #tpu.memory_space<vmem>>, vector<8x8xbf16>
    %cst_16 = arith.constant dense<0.000000e+00> : vector<8x8xf32>
    %17 = tpu.matmul %14, %15, %cst_16 {dimension_numbers = #tpu.dot_dimension_numbers<[1], [1], [0], [0], [0, 0, 1, 0], [], []>} : vector<8x8xbf16>, vector<8x8xbf16>, vector<8x8xf32> -> vector<8x8xf32>
    %cst_17 = arith.constant dense<0xFF800000> : vector<8xf32>
    %18 = vector.multi_reduction <maximumf>, %17, %cst_17 [1] : vector<8x8xf32> to vector<8xf32>
    %19 = vector.shape_cast %18 : vector<8xf32> to vector<8x1xf32>
    %20 = vector.broadcast %19 : vector<8x1xf32> to vector<8x8xf32>
    %21 = arith.subf %17, %20 : vector<8x8xf32>
    %22 = math.exp %21 : vector<8x8xf32>
    %cst_18 = arith.constant dense<0.000000e+00> : vector<8xf32>
    %23 = vector.multi_reduction <add>, %22, %cst_18 [1] : vector<8x8xf32> to vector<8xf32>
    %24 = vector.shape_cast %23 : vector<8xf32> to vector<8x1xf32>
    %25 = tpu.reciprocal %24 {approx = true} : vector<8x1xf32> -> vector<8x1xf32>
    %26 = vector.broadcast %25 : vector<8x1xf32> to vector<8x8xf32>
    %27 = arith.mulf %22, %26 : vector<8x8xf32>
    %28 = arith.truncf %27 : vector<8x8xf32> to vector<8x8xbf16>
    %cst_19 = arith.constant dense<0.000000e+00> : vector<8x8xf32>
    %29 = tpu.matmul %28, %16, %cst_19 {dimension_numbers = #tpu.dot_dimension_numbers<[1], [0], [0], [1], [0, 0, 1, 1], [], []>} : vector<8x8xbf16>, vector<8x8xbf16>, vector<8x8xf32> -> vector<8x8xf32>
    %30 = arith.truncf %29 : vector<8x8xf32> to vector<8x8xbf16>
    %c0_20 = arith.constant 0 : index
    %c0_21 = arith.constant 0 : index
    %31 = vector.load %arg17[%c0_20, %c0_21] : memref<8x32xbf16, #tpu.memory_space<vmem>>, vector<8x8xbf16>
    tpu.vector_store %arg17[%c0_20, %c0_21], %30 {strides = array<i32>} : memref<8x32xbf16, #tpu.memory_space<vmem>>, vector<8x8xbf16>,
    %c0_22 = arith.constant 0 : index
    %c8 = arith.constant 8 : index
    %32 = vector.load %arg16[%c0_22, %c8] : memref<8x32xbf16, #tpu.memory_space<vmem>>, vector<8x8xbf16>
    %c0_23 = arith.constant 0 : index
    %c8_24 = arith.constant 8 : index
    %33 = vector.load %arg14[%c0_23, %c8_24] : memref<8x32xbf16, #tpu.memory_space<vmem>>, vector<8x8xbf16>
    %c0_25 = arith.constant 0 : index
    %c8_26 = arith.constant 8 : index
    %34 = vector.load %arg15[%c0_25, %c8_26] : memref<8x32xbf16, #tpu.memory_space<vmem>>, vector<8x8xbf16>
    %cst_27 = arith.constant dense<0.000000e+00> : vector<8x8xf32>
    %35 = tpu.matmul %32, %33, %cst_27 {dimension_numbers = #tpu.dot_dimension_numbers<[1], [1], [0], [0], [0, 0, 1, 0], [], []>} : vector<8x8xbf16>, vector<8x8xbf16>, vector<8x8xf32> -> vector<8x8xf32>
    %cst_28 = arith.constant dense<0xFF800000> : vector<8xf32>
    %36 = vector.multi_reduction <maximumf>, %35, %cst_28 [1] : vector<8x8xf32> to vector<8xf32>
    %37 = vector.shape_cast %36 : vector<8xf32> to vector<8x1xf32>
    %38 = vector.broadcast %37 : vector<8x1xf32> to vector<8x8xf32>
    %39 = arith.subf %35, %38 : vector<8x8xf32>
    %40 = math.exp %39 : vector<8x8xf32>
    %cst_29 = arith.constant dense<0.000000e+00> : vector<8xf32>
    %41 = vector.multi_reduction <add>, %40, %cst_29 [1] : vector<8x8xf32> to vector<8xf32>
    %42 = vector.shape_cast %41 : vector<8xf32> to vector<8x1xf32>
    %43 = tpu.reciprocal %42 {approx = true} : vector<8x1xf32> -> vector<8x1xf32>
    %44 = vector.broadcast %43 : vector<8x1xf32> to vector<8x8xf32>
    %45 = arith.mulf %40, %44 : vector<8x8xf32>
    %46 = arith.truncf %45 : vector<8x8xf32> to vector<8x8xbf16>
    %cst_30 = arith.constant dense<0.000000e+00> : vector<8x8xf32>
    %47 = tpu.matmul %46, %34, %cst_30 {dimension_numbers = #tpu.dot_dimension_numbers<[1], [0], [0], [1], [0, 0, 1, 1], [], []>} : vector<8x8xbf16>, vector<8x8xbf16>, vector<8x8xf32> -> vector<8x8xf32>
    %48 = arith.truncf %47 : vector<8x8xf32> to vector<8x8xbf16>
    %c0_31 = arith.constant 0 : index
    %c8_32 = arith.constant 8 : index
    %49 = vector.load %arg17[%c0_31, %c8_32] : memref<8x32xbf16, #tpu.memory_space<vmem>>, vector<8x8xbf16>
    tpu.vector_store %arg17[%c0_31, %c8_32], %48 {strides = array<i32>} : memref<8x32xbf16, #tpu.memory_space<vmem>>, vector<8x8xbf16>,
    %c0_33 = arith.constant 0 : index
    %c16 = arith.constant 16 : index
    %50 = vector.load %arg16[%c0_33, %c16] : memref<8x32xbf16, #tpu.memory_space<vmem>>, vector<8x8xbf16>
    %c0_34 = arith.constant 0 : index
    %c16_35 = arith.constant 16 : index
    %51 = vector.load %arg14[%c0_34, %c16_35] : memref<8x32xbf16, #tpu.memory_space<vmem>>, vector<8x8xbf16>
    %c0_36 = arith.constant 0 : index
    %c16_37 = arith.constant 16 : index
    %52 = vector.load %arg15[%c0_36, %c16_37] : memref<8x32xbf16, #tpu.memory_space<vmem>>, vector<8x8xbf16>
    %cst_38 = arith.constant dense<0.000000e+00> : vector<8x8xf32>
    %53 = tpu.matmul %50, %51, %cst_38 {dimension_numbers = #tpu.dot_dimension_numbers<[1], [1], [0], [0], [0, 0, 1, 0], [], []>} : vector<8x8xbf16>, vector<8x8xbf16>, vector<8x8xf32> -> vector<8x8xf32>
    %cst_39 = arith.constant dense<0xFF800000> : vector<8xf32>
    %54 = vector.multi_reduction <maximumf>, %53, %cst_39 [1] : vector<8x8xf32> to vector<8xf32>
    %55 = vector.shape_cast %54 : vector<8xf32> to vector<8x1xf32>
    %56 = vector.broadcast %55 : vector<8x1xf32> to vector<8x8xf32>
    %57 = arith.subf %53, %56 : vector<8x8xf32>
    %58 = math.exp %57 : vector<8x8xf32>
    %cst_40 = arith.constant dense<0.000000e+00> : vector<8xf32>
    %59 = vector.multi_reduction <add>, %58, %cst_40 [1] : vector<8x8xf32> to vector<8xf32>
    %60 = vector.shape_cast %59 : vector<8xf32> to vector<8x1xf32>
    %61 = tpu.reciprocal %60 {approx = true} : vector<8x1xf32> -> vector<8x1xf32>
    %62 = vector.broadcast %61 : vector<8x1xf32> to vector<8x8xf32>
    %63 = arith.mulf %58, %62 : vector<8x8xf32>
    %64 = arith.truncf %63 : vector<8x8xf32> to vector<8x8xbf16>
    %cst_41 = arith.constant dense<0.000000e+00> : vector<8x8xf32>
    %65 = tpu.matmul %64, %52, %cst_41 {dimension_numbers = #tpu.dot_dimension_numbers<[1], [0], [0], [1], [0, 0, 1, 1], [], []>} : vector<8x8xbf16>, vector<8x8xbf16>, vector<8x8xf32> -> vector<8x8xf32>
    %66 = arith.truncf %65 : vector<8x8xf32> to vector<8x8xbf16>
    %c0_42 = arith.constant 0 : index
    %c16_43 = arith.constant 16 : index
    %67 = vector.load %arg17[%c0_42, %c16_43] : memref<8x32xbf16, #tpu.memory_space<vmem>>, vector<8x8xbf16>
    tpu.vector_store %arg17[%c0_42, %c16_43], %66 {strides = array<i32>} : memref<8x32xbf16, #tpu.memory_space<vmem>>, vector<8x8xbf16>,
    %c0_44 = arith.constant 0 : index
    %c24 = arith.constant 24 : index
    %68 = vector.load %arg16[%c0_44, %c24] : memref<8x32xbf16, #tpu.memory_space<vmem>>, vector<8x8xbf16>
    %c0_45 = arith.constant 0 : index
    %c24_46 = arith.constant 24 : index
    %69 = vector.load %arg14[%c0_45, %c24_46] : memref<8x32xbf16, #tpu.memory_space<vmem>>, vector<8x8xbf16>
    %c0_47 = arith.constant 0 : index
    %c24_48 = arith.constant 24 : index
    %70 = vector.load %arg15[%c0_47, %c24_48] : memref<8x32xbf16, #tpu.memory_space<vmem>>, vector<8x8xbf16>
    %cst_49 = arith.constant dense<0.000000e+00> : vector<8x8xf32>
    %71 = tpu.matmul %68, %69, %cst_49 {dimension_numbers = #tpu.dot_dimension_numbers<[1], [1], [0], [0], [0, 0, 1, 0], [], []>} : vector<8x8xbf16>, vector<8x8xbf16>, vector<8x8xf32> -> vector<8x8xf32>
    %cst_50 = arith.constant dense<0xFF800000> : vector<8xf32>
    %72 = vector.multi_reduction <maximumf>, %71, %cst_50 [1] : vector<8x8xf32> to vector<8xf32>
    %73 = vector.shape_cast %72 : vector<8xf32> to vector<8x1xf32>
    %74 = vector.broadcast %73 : vector<8x1xf32> to vector<8x8xf32>
    %75 = arith.subf %71, %74 : vector<8x8xf32>
    %76 = math.exp %75 : vector<8x8xf32>
    %cst_51 = arith.constant dense<0.000000e+00> : vector<8xf32>
    %77 = vector.multi_reduction <add>, %76, %cst_51 [1] : vector<8x8xf32> to vector<8xf32>
    %78 = vector.shape_cast %77 : vector<8xf32> to vector<8x1xf32>
    %79 = tpu.reciprocal %78 {approx = true} : vector<8x1xf32> -> vector<8x1xf32>
    %80 = vector.broadcast %79 : vector<8x1xf32> to vector<8x8xf32>
    %81 = arith.mulf %76, %80 : vector<8x8xf32>
    %82 = arith.truncf %81 : vector<8x8xf32> to vector<8x8xbf16>
    %cst_52 = arith.constant dense<0.000000e+00> : vector<8x8xf32>
    %83 = tpu.matmul %82, %70, %cst_52 {dimension_numbers = #tpu.dot_dimension_numbers<[1], [0], [0], [1], [0, 0, 1, 1], [], []>} : vector<8x8xbf16>, vector<8x8xbf16>, vector<8x8xf32> -> vector<8x8xf32>
    %84 = arith.truncf %83 : vector<8x8xf32> to vector<8x8xbf16>
    %c0_53 = arith.constant 0 : index
    %c24_54 = arith.constant 24 : index
    %85 = vector.load %arg17[%c0_53, %c24_54] : memref<8x32xbf16, #tpu.memory_space<vmem>>, vector<8x8xbf16>
    tpu.vector_store %arg17[%c0_53, %c24_54], %84 {strides = array<i32>} : memref<8x32xbf16, #tpu.memory_space<vmem>>, vector<8x8xbf16>,
    %c0_55 = arith.constant 0 : index
    %c0_56 = arith.constant 0 : index
    %86 = vector.load %arg17[%c0_55, %c0_56] : memref<8x32xbf16, #tpu.memory_space<vmem>>, vector<8x32xbf16>
    %c0_57 = arith.constant 0 : index
    %c0_58 = arith.constant 0 : index
    %87 = vector.load %arg11[%c0_57, %c0_58] : memref<32x128xbf16, #tpu.memory_space<vmem>>, vector<32x128xbf16>
    %cst_59 = arith.constant dense<0.000000e+00> : vector<8x128xf32>
    %88 = tpu.matmul %86, %87, %cst_59 {dimension_numbers = #tpu.dot_dimension_numbers<[1], [0], [0], [1], [0, 0, 1, 1], [], []>} : vector<8x32xbf16>, vector<32x128xbf16>, vector<8x128xf32> -> vector<8x128xf32>
    %c0_60 = arith.constant 0 : index
    %c0_61 = arith.constant 0 : index
    %89 = vector.load %arg12[%c0_60, %c0_61] : memref<1x128xf32, #tpu.memory_space<vmem>>, vector<1x128xf32>
    %90 = vector.broadcast %89 : vector<1x128xf32> to vector<8x128xf32>
    %91 = arith.addf %88, %90 : vector<8x128xf32>
    %c0_62 = arith.constant 0 : index
    %c0_63 = arith.constant 0 : index
    %c0_64 = arith.constant 0 : index
    %92 = vector.load %arg13[%c0_62, %c0_63, %c0_64] : memref<1x8x128xf32, #tpu.memory_space<vmem>>, vector<1x8x128xf32>
    %93 = vector.shape_cast %92 : vector<1x8x128xf32> to vector<8x128xf32>
    %94 = vector.shape_cast %91 : vector<8x128xf32> to vector<1x8x128xf32>
    tpu.vector_store %arg13[%c0_62, %c0_63, %c0_64], %94 {strides = array<i32>} : memref<1x8x128xf32, #tpu.memory_space<vmem>>, vector<1x8x128xf32>,
    return
  }
  func.func @transform_0(%arg0: i32, %arg1: i32) -> (i32, i32, i32) {
    %c0_i32 = arith.constant 0 : i32
    %c0_i32_0 = arith.constant 0 : i32
    return %arg0, %arg1, %c0_i32 : i32, i32, i32
  }
  func.func @transform_1(%arg0: i32, %arg1: i32) -> (i32, i32, i32) {
    %c0_i32 = arith.constant 0 : i32
    %c0_i32_0 = arith.constant 0 : i32
    %c0_i32_1 = arith.constant 0 : i32
    return %arg0, %c0_i32, %c0_i32_0 : i32, i32, i32
  }
  func.func @transform_2(%arg0: i32, %arg1: i32) -> (i32, i32, i32) {
    %c0_i32 = arith.constant 0 : i32
    %c0_i32_0 = arith.constant 0 : i32
    %c0_i32_1 = arith.constant 0 : i32
    return %arg0, %c0_i32, %c0_i32_0 : i32, i32, i32
  }
  func.func @transform_3(%arg0: i32, %arg1: i32) -> (i32, i32) {
    %c0_i32 = arith.constant 0 : i32
    %c0_i32_0 = arith.constant 0 : i32
    %c0_i32_1 = arith.constant 0 : i32
    return %c0_i32, %c0_i32_0 : i32, i32
  }
  func.func @transform_4(%arg0: i32, %arg1: i32) -> (i32, i32) {
    %c0_i32 = arith.constant 0 : i32
    %c0_i32_0 = arith.constant 0 : i32
    %c0_i32_1 = arith.constant 0 : i32
    return %c0_i32, %c0_i32_0 : i32, i32
  }
  func.func @transform_5(%arg0: i32, %arg1: i32) -> (i32, i32) {
    %c0_i32 = arith.constant 0 : i32
    %c0_i32_0 = arith.constant 0 : i32
    %c0_i32_1 = arith.constant 0 : i32
    return %c0_i32, %c0_i32_0 : i32, i32
  }
  func.func @transform_6(%arg0: i32, %arg1: i32) -> (i32, i32) {
    %c0_i32 = arith.constant 0 : i32
    %c0_i32_0 = arith.constant 0 : i32
    %c0_i32_1 = arith.constant 0 : i32
    return %c0_i32, %c0_i32_0 : i32, i32
  }
  func.func @transform_7(%arg0: i32, %arg1: i32) -> (i32, i32) {
    %c0_i32 = arith.constant 0 : i32
    %c0_i32_0 = arith.constant 0 : i32
    %c0_i32_1 = arith.constant 0 : i32
    return %c0_i32, %c0_i32_0 : i32, i32
  }
  func.func @transform_8(%arg0: i32, %arg1: i32) -> (i32, i32) {
    %c0_i32 = arith.constant 0 : i32
    %c0_i32_0 = arith.constant 0 : i32
    %c0_i32_1 = arith.constant 0 : i32
    return %c0_i32, %c0_i32_0 : i32, i32
  }
  func.func @transform_9(%arg0: i32, %arg1: i32) -> (i32, i32) {
    %c0_i32 = arith.constant 0 : i32
    %c0_i32_0 = arith.constant 0 : i32
    %c0_i32_1 = arith.constant 0 : i32
    return %c0_i32, %c0_i32_0 : i32, i32
  }
  func.func @transform_10(%arg0: i32, %arg1: i32) -> (i32, i32) {
    %c0_i32 = arith.constant 0 : i32
    %c0_i32_0 = arith.constant 0 : i32
    %c0_i32_1 = arith.constant 0 : i32
    return %c0_i32, %c0_i32_0 : i32, i32
  }
  func.func @transform_11(%arg0: i32, %arg1: i32) -> (i32, i32, i32) {
    %c0_i32 = arith.constant 0 : i32
    %c0_i32_0 = arith.constant 0 : i32
    return %arg0, %arg1, %c0_i32 : i32, i32, i32
  }
}

</mosaic_0001>

<bundles_post_ra>
// kernel: tpu_custom_call.1
= control target key start
LH: loop header
LB: loop body
LE: loop exit
PB: predicated region body
PF: predicated region fallthrough
CT: control target
= control target key end

     0   :  { %s2062_s0 = inlined_call_operand.hbm [shape: bf16[2,8,32], index: 0, kind: input, shape index: {}]   ;;  %s2063_s1 = inlined_call_operand.hbm [shape: bf16[2,8,32], index: 1, kind: input, shape index: {}]   ;;  %s2064_s2 = inlined_call_operand.hbm [shape: bf16[2,8,32], index: 2, kind: input, shape index: {}]   ;;  %s2065_s3 = inlined_call_operand.hbm [shape: bf16[32,32], index: 3, kind: input, shape index: {}]   ;;  %s2066_s4 = inlined_call_operand.vmem [shape: f32[1,32], index: 4, kind: input, shape index: {}]   ;;  %s2067_s5 = inlined_call_operand.hbm [shape: bf16[32,32], index: 5, kind: input, shape index: {}]   ;;  %s2068_s6 = inlined_call_operand.vmem [shape: f32[1,32], index: 6, kind: input, shape index: {}]   ;;  %s2069_s7 = inlined_call_operand.hbm [shape: bf16[32,32], index: 7, kind: input, shape index: {}]   ;;  %s2070_s8 = inlined_call_operand.vmem [shape: f32[1,32], index: 8, kind: input, shape index: {}]   ;;  %s2071_s9 = inlined_call_operand.hbm [shape: bf16[32,128], index: 9, kind: input, shape index: {}]   ;;  %s2072_s10 = inlined_call_operand.vmem [shape: f32[1,128], index: 10, kind: input, shape index: {}]   ;;  %s2073_s11 = inlined_call_operand.hbm [shape: f32[2,8,128], index: 11, kind: output, shape index: {}]  }
   0x1   :  { %2087 = sst [smem:[#allocation31_spill]] %s2062_s0 }
   0x2   :  { %2088 = sst [smem:[#allocation32_spill]] %s2063_s1 }
   0x3   :  { %2089 = sst [smem:[#allocation33_spill]] %s2065_s3 }
   0x4   :  { %2090 = sst [smem:[#allocation34_spill]] %s2067_s5 }
   0x5   :  { %2091 = sst [smem:[#allocation35_spill]] %s2069_s7 }
   0x6   :  { %2092 = sst [smem:[#allocation36_spill]] %s2071_s9 }
   0x7   :  { %2093 = sst [smem:[#allocation37_spill]] %s2072_s10 }
   0x8   :  { %16 = vsyncpa [#allocation7], 0 }
   0x9   :  { %18 = vsyncpa [#allocation7 + $0x1], 0 }
   0xa   :  { %19 = vsyncpa [#allocation10], 0 }
   0xb   :  { %21 = vsyncpa [#allocation10 + $0x1], 0 }
   0xc   :  { %22 = vsyncpa [#allocation13], 0 }
   0xd   :  { %23 = vsyncpa [#allocation16], 0 }
   0xe   :  { %24 = vsyncpa [#allocation8], 0 }
   0xf   :  { %26 = vsyncpa [#allocation8 + $0x1], 0  ;;  %s1786_s17 = smov 0   ;;  %s1788_s18 = smov 0  }
  0x10   :  { %s1790_s19 = smov 0   ;;  %s1792_s20 = smov 0  }
  0x11   :  { %s1794_s21 = smov 0   ;;  %s1796_s22 = smov 0  }
  0x12 LB: > { %2094 = sst [smem:[#allocation24_spill]] %s1692_s17  ;;  %s1817_s23 = sadd.s32 4294967295, %s1712_s22   ;;  %s1712_s22 = sphi %s1796_s22, %s32_s22   ;;  %s1708_s21 = sphi %s1794_s21, %s2124_s21   ;;  %s1704_s20 = sphi %s1792_s20, %s2123_s20   ;;  %s1700_s19 = sphi %s1790_s19, %s2127_s19   ;;  %s1696_s18 = sphi %s1788_s18, %s2126_s18   ;;  %s1692_s17 = sphi %s1786_s17, %s2125_s17  }
  0x13   : > { %2095 = sst [smem:[#allocation25_spill]] %s1708_s21  ;;  %p1190_p0 = scmp.ge.s32.totalorder %s1712_s22, 1 }
  0x14   : > { %2096 = sst [smem:[#allocation26_spill]] %s1712_s22  ;;  %p67_p1 = scmp.eq.s32.totalorder %s1817_s23, 0 }
  0x15   : > { %p325_p2 = scmp.lt.s32.totalorder %s1712_s22, 3  ;;  %s2097_s3 = sld [smem:[#allocation33_spill]] }
  0x16   : > { %s1714_s28 = smov [#allocation12]   ;;  %p1195_p6 = scmp.ge.s32.totalorder %s1712_s22, 2 }
  0x17   : > { %p1825_p3 = pnand %p1190_p0, %p325_p2  ;;  %s338_s29 = sshll.u32 %s1714_s28, 4  ;;  %s339_s29 = int_to_ptr.vmem [resolvable:$true] %s338_s29 }
  0x18   : > { %s2100_s7 = sld [smem:[#allocation35_spill]]  ;;  %s2074_s15 = smov 64  }
  0x19   : > { %p1291_p4 = pneg %p1825_p3  ;;  %s2076_s16 = smov 4  }
  0x1a   : > { %s1717_s24 = smov [#allocation15]   ;;  %s1189_s28 = sadd.s32 4294967294, %s1712_s22  }
  0x1b   : > { %s336_s26 = sshll.u32 %s2097_s3, 4  ;;  %p1833_p5 = pnand %p1291_p4, %p67_p1  ;;  %s337_s26 = int_to_ptr.hbm [resolvable:$true] %s336_s26 }
  0x1c   : > { %s372_s25 = sshll.u32 %s1717_s24, 4  ;;  %s44_s12 = sadd.s32 1, %s1708_s21  ;;  %s373_s25 = int_to_ptr.vmem [resolvable:$true] %s372_s25 }
  0x1d   : > { %1294 = dma.hbm_to_vmem [thread:$0]  (!%p1833_p5), %s337_s26, 256, %s339_s29, [#allocation13], %s2074_s15, %s2074_s15, %s2076_s16  }
  0x1e   : > { %s370_s14 = sshll.u32 %s2100_s7, 4  ;;  %p46_p7 = scmp.ge.s32.totalorder %s44_s12, 2  ;;  %s371_s14 = int_to_ptr.hbm [resolvable:$true] %s370_s14 }
  0x1f   : > { %1300 = dma.hbm_to_vmem [thread:$0]  (!%p1833_p5), %s371_s14, 256, %s373_s25, [#allocation16], %s2074_s15, %s2074_s15, %s2076_s16  }
  0x20   : > { %s53_s13 = sadd.s32 1, %s1700_s19  ;;  %p60_p8 = scmp.ne.s32.totalorder %s1700_s19, %s1696_s18 }
  0x21   : > { %p61_p9 = scmp.eq.s32.totalorder %s1712_s22, 0  ;;  %s2129_s12 = smov (%p46_p7, %s44_s12), 0 }
  0x22   : > { %2101 = sst [smem:[#allocation27_spill]] %s2129_s12  ;;  %p66_p11 = scmp.ne.s32.totalorder %s1696_s18, %s1692_s17 }
  0x23   : > { %p1859_p10 = por %p61_p9, %p60_p8  ;;  %s48_s29 = ssub.s32 %s1708_s21, %s2129_s12 }
  0x24   : > { %p312_p12 = scmp.eq.s32.totalorder %s1817_s23, 1  ;;  %p51_p13 = scmp.eq.s32.totalorder %s48_s29, 0 }
  0x25   : > { %p1870_p0 = por %p67_p1, %p66_p11  ;;  %p318_p4 = scmp.eq.s32.totalorder %s1189_s28, 1 }
  0x26   : > { %p1874_p2 = por %p312_p12, %p60_p8  ;;  %p1322_p9 = scmp.lt.s32.totalorder %s1712_s22, 2 }
  0x27   : > { %s1879_s25 = scalar_select %p51_p13, %s1700_s19, %s53_s13  }
  0x28   : > { %s2104_s24 = scalar_select %p1874_p2, 1, 0 }
  0x29   : > { %2106 = sst [smem:[#allocation29_spill]] %s1879_s25  ;;  %p1881_p7 = por %p318_p4, %p66_p11 }
  0x2a   : > { %2105 = sst [smem:[#allocation28_spill]] %s2104_s24  ;;  %s2082_s16 = sand.u32 1, %s1700_s19  }
  0x2b   : > { %s2107_s15 = scalar_select %p1881_p7, 1, 0 }
  0x2c   : > { %s1888_s3 = sshll.u32 %s1708_s21, 2  ;;  %s1892_s29 = sshll.u32 %s2082_s16, 2 }
  0x2d   : > { %2108 = sst [smem:[#allocation30_spill]] %s2107_s15  ;;  %p1896_p8 = pnand %p1322_p9, %p1859_p10 }
  0x2e   : > { %s426_s28 = sand.u32 1, %s1712_s22   ;;  %s2110_s1 = sld [smem:[#allocation32_spill]] }
  0x2f   : > { %s430_s15 = scalar_lea.vmem [#allocation9], %s1892_s29  ;;  %s2111_s5 = sld [smem:[#allocation34_spill]] }
  0x30   : > { %s438_s21 = sshll.u32 %s430_s15, 4  ;;  %s427_s24 = scalar_lea.sflag [#allocation10], %s426_s28  ;;  %s439_s21 = int_to_ptr.vmem [resolvable:$true] %s438_s21 }
  0x31   : > { %s1718_s22 = smov [#allocation14]   ;;  %s2112_s9 = sld [smem:[#allocation36_spill]] }
  0x32   : > { %s355_s12 = sshll.u32 %s1718_s22, 4  ;;  %s2114_s16 = smov 64   ;;  %s356_s12 = int_to_ptr.vmem [resolvable:$true] %s355_s12 }
  0x33   : > { %s1719_s28 = smov [#allocation17]   ;;  %s2115_s0 = sld [smem:[#allocation31_spill]] }
  0x34   : > { %s434_s25 = scalar_lea.hbm %s2110_s1, %s1888_s3  ;;  %s410_s13 = scalar_lea.vmem [#allocation6], %s1892_s29 }
  0x35   : > { %s436_s17 = sshll.u32 %s434_s25, 4  ;;  %s353_s10 = sshll.u32 %s2111_s5, 4  ;;  %s437_s17 = int_to_ptr.hbm [resolvable:$true] %s436_s17  ;;  %s354_s10 = int_to_ptr.hbm [resolvable:$true] %s353_s10 }
  0x36   : > { %1310 = dma.hbm_to_vmem [thread:$0]  (!%p1896_p8), %s437_s17, 64, %s439_s21, %s427_s24  }
  0x37   : > { %s387_s15 = sshll.u32 %s2112_s9, 4  ;;  %s2113_s25 = smov 4   ;;  %s388_s15 = int_to_ptr.hbm [resolvable:$true] %s387_s15 }
  0x38   : > { %1297 = dma.hbm_to_vmem [thread:$0]  (!%p1833_p5), %s354_s10, 256, %s356_s12, [#allocation13], %s2114_s16, %s2114_s16, %s2113_s25  }
  0x39   : > { %s389_s17 = sshll.u32 %s1719_s28, 4  ;;  %s415_s22 = scalar_lea.hbm %s2115_s0, %s1888_s3  ;;  %s390_s17 = int_to_ptr.vmem [resolvable:$true] %s389_s17 }
  0x3a   : > { %1303 = dma.hbm_to_vmem [thread:$0]  (!%p1833_p5), %s388_s15, 256, %s390_s17, [#allocation16], %s2114_s16, %s2114_s16, %s2113_s25  }
  0x3b   : > { %s417_s1 = sshll.u32 %s415_s22, 4  ;;  %s419_s5 = sshll.u32 %s410_s13, 4  ;;  %s418_s1 = int_to_ptr.hbm [resolvable:$true] %s417_s1  ;;  %s420_s5 = int_to_ptr.vmem [resolvable:$true] %s419_s5 }
  0x3c   : > { %s2116_s9 = sand.u32 1, %s1700_s19   ;;  %s453_s21 = scalar_lea.hbm %s2064_s2, %s1888_s3 }
  0x3d   : > { %s407_s10 = scalar_lea.sflag [#allocation7], %s2116_s9  ;;  %s455_s26 = sshll.u32 %s453_s21, 4  ;;  %s456_s26 = int_to_ptr.hbm [resolvable:$true] %s455_s26 }
  0x3e   : > { %1307 = dma.hbm_to_vmem [thread:$0]  (!%p1896_p8), %s418_s1, 64, %s420_s5, %s407_s10  }
  0x3f   : > { %s449_s0 = scalar_lea.vmem [#allocation11], %s1892_s29  ;;  %466 = sbr.rel (%p1825_p3) target bundleno = 1166 (0x48e), region = 64 }
  0x40   : > { %s457_s30 = sshll.u32 %s449_s0, 4  ;;  %s1943_s15 = sand.u32 (!%p1825_p3), 1, %s1696_s18   ;;  %s458_s30 = int_to_ptr.vmem [resolvable:$true] %s457_s30 }
  0x41   : > { %1313 = dma.hbm_to_vmem [thread:$0]  (!%p1896_p8), %s456_s26, 64, %s458_s30, %s427_s24  }
  0x42   : > { %s1946_s5 = sshll.u32 (!%p1825_p3), %s1943_s15, 2  ;;  %s469_s3 = scalar_lea.sflag (!%p1825_p3), [#allocation7], %s1943_s15 }
  0x43   : > { %s472_s9 = scalar_lea.vmem (!%p1825_p3), [#allocation6], %s1946_s5 }
  0x44   : > { %1671 = dma.done.wait (%p1870_p0), %s469_s3, 64  }
  0x45   : > { %1673 = vsyncadd (%p1870_p0), %s469_s3, 4294967232  ;;  %s478_s0 = sand.u32 1, %s1817_s23   ;;  %s482_s27 = scalar_lea.vmem [#allocation9], %s1946_s5 }
  0x46   : > { %s479_s7 = scalar_lea.sflag [#allocation10], %s478_s0 }
  0x47   : > { %1675 = dma.done.wait (%p1870_p0), %s479_s7, 128  }
  0x48   : > { %1677 = vsyncadd (%p1870_p0), %s479_s7, 4294967168  ;;  %s492_s24 = scalar_lea.vmem [#allocation11], %s1946_s5 }
  0x49   : > { %1679 = dma.done.wait (%p67_p1), [#allocation13], 512  }
  0x4a   : > { %1681 = vsyncadd (%p67_p1), [#allocation13], 4294966784 }
  0x4b   : > { %1683 = dma.done.wait (%p67_p1), [#allocation16], 512  }
  0x4c   : > { %1685 = vsyncadd (%p67_p1), [#allocation16], 4294966784  ;;  %v1260_v0 = vld [vmem:[#allocation14 + $0x8] sm:$0xff]  ;;  %v1264_v1 = vld [vmem:[#allocation12 + $0x8] sm:$0xff]  ;;  %vm588_vm0 = vcmask 261120   ;;  %vm606_vm1 = vcmask 257024  }
  0x4d   : > { %v1259_v2 = vld [vmem:[#allocation14] sm:$0xff]  ;;  %598 = vmatpush.bf16.msra.mxu0 %v1260_v0  ;;  %678 = vmatpush.bf16.msra.mxu2 %v1264_v1  ;;  %v1263_v3 = vld [vmem:[#allocation12] sm:$0xff]  ;;  %v647_v5 = vld [vmem:[%s472_s9] sm:$0xf]  ;;  %vm692_vm2 = vcmask 64512   ;;  %s1720_s16 = smov 112  }
  0x4e   : > { %v567_v4 = vld [vmem:[%s482_s27] sm:$0xf]  ;;  %v1388_v6 = vld [vmem:[%s2068_s6] ss:$0 sm:$0xff]  ;;  %v1262_v9 = vld [vmem:[#allocation15 + $0x8] sm:$0xff]  ;;  %s1721_s17 = smov 120  }
  0x4f   : > { %v1389_v11 = vld [vmem:[%s2066_s4] ss:$0 sm:$0xff]  ;;  %638 = vmatpush.bf16.msra.mxu1 %v1262_v9  ;;  %v1261_v12 = vld [vmem:[#allocation15] sm:$0xff]  ;;  %s1722_s22 = smov 104   ;;  %vm727_vm3 = vcmask 1043456   ;;  %vm745_vm4 = vcmask 60416  }
  0x50   : > { %v608_v40 = vld [vmem:[%s492_s24] sm:$0xf]  ;;  %s1723_s10 = smov 8   ;;  %s1724_s12 = smov 24   ;;  %vm820_vm5 = vcmask 126016   ;;  %vm895_vm6 = vcmask 191616  }
  0x51   : > { %599 = vmatpush.bf16.msra.mxu0 %v1259_v2  ;;  %679 = vmatpush.bf16.msra.mxu2 %v1263_v3  ;;  %v1390_v53 = vld [vmem:[%s2070_s8] ss:$0 sm:$0xff]  ;;  %s1725_s28 = smov 16   ;;  %vm970_vm7 = vcmask 257216   ;;  %s1256_s21 = sshll.u32 %s1704_s20, 3 }
  0x52   : > { %s1210_s26 = sshll.u32 %s1943_s15, 3  ;;  %s1022_s9 = scalar_lea.hbm %s2073_s11, %s1256_s21 }
  0x53   : > { %639 = vmatpush.bf16.msra.mxu1 %v1261_v12  ;;  %s2118_s27 = sld [smem:[#allocation37_spill]]  ;;  %s561_s24 = scalar_lea.vmem [#allocation18], %s1210_s26 }
  0x54   : > { %1219 = vmatmul.msk.bf16.vlgmr.msra.gmra.mxu0 %vm588_vm0, %v567_v4  ;;  %1237 = vmatmul.msk.bf16.vlgmr.msra.gmra.mxu2 %vm588_vm0, %v647_v5  ;;  %s1024_s14 = sshll.u32 %s561_s24, 4  ;;  %s1026_s29 = sshll.u32 %s1022_s9, 4  ;;  %s1025_s14 = int_to_ptr.vmem [resolvable:$true] %s1024_s14  ;;  %s1027_s29 = int_to_ptr.hbm [resolvable:$true] %s1026_s29 }
  0x55   : > { %s1011_s23 = scalar_lea.sflag [#allocation8], %s1943_s15  ;;  %s1632_s20 = sshra.s32 %s1027_s29, 4  ;;  %s1633_s20 = int_to_ptr.hbm [resolvable:$true] %s1632_s20 }
  0x56   : > { %1228 = vmatmul.msk.bf16.vlgmr.msra.gmra.mxu1 %vm588_vm0, %v608_v40  ;;  %s1634_s25 = scalar_lea.hbm %s1633_s20, 8  ;;  %p1639_p10 = scmp.lt.s32.totalorder %s1633_s20, %s2073_s11 }
  0x57   : > { %p1635_p1 = scmp.ne.s32.totalorder %s1633_s20, %s1634_s25 }
  0x59   : > { %p1636_p3 = pnand %p1635_p1, %p1874_p2 }
  0x5b   : > { %p1637_p5 = pneg %p1636_p3 }
  0xd1   : > { %v601_v7 = vpop.f32.mrf.mxu0 }
  0xd2   : > { %v602_v8 = vadd.f32 %v1388_v6, %v601_v7 }
  0xd3   : > { %v641_v54 = vpop.f32.mrf.mxu1 }
  0xd4   : > { %v605_v10 = vpack.c.bf16 %v602_v8, %v602_v8  ;;  %v642_v55 = vadd.f32 %v1390_v53, %v641_v54 }
  0xd6   : > { %607 = vst.msk [vmem:[#allocation2] sm:$0xf] %vm606_vm1, %v605_v10  ;;  %v645_v56 = vpack.c.bf16 %v642_v55, %v642_v55 }
  0xd7   : > { %v681_v13 = vpop.f32.mrf.mxu2 }
  0xd8   : > { %v682_v14 = vadd.f32 %v1389_v11, %v681_v13  ;;  %646 = vst.msk [vmem:[#allocation3] sm:$0xf] %vm606_vm1, %v645_v56 }
  0xd9   : > { %v603_v15 = vpop.f32.mrf.mxu0 }
  0xda   : > { %v685_v16 = vmul.f32 0.35355338, %v682_v14 }
  0xdb   : > { %v643_v57 = vpop.f32.mrf.mxu1 }
  0xdc   : > { %v686_v17 = vpack.c.bf16 %v685_v16, %v685_v16 }
  0xdd   : > { %v690_v18 = vld [vmem:[#allocation2] sm:$0xf] }
  0xde   : > { %v823_v19 = vld [vmem:[#allocation2] sm:$0xf]  ;;  %688 = vst.msk [vmem:[#allocation4] sm:$0xf] %vm606_vm1, %v686_v17  ;;  %v697_v21 = vsel %vm692_vm2, %v690_v18, 0 }
  0xdf   : > { %v748_v20 = vld [vmem:[#allocation2] sm:$0xf]  ;;  %v831_v22 = vunpack.c.l.b16 %v823_v19  ;;  %v683_v24 = vpop.f32.mrf.mxu2  ;;  %706 = vmatpush.bf16.xpose.msra.mxu3 %v697_v21  ;;  %v691_v58 = vld [vmem:[#allocation3] sm:$0xf] }
  0xe0   : > { %v756_v23 = vunpack.c.l.b16 %v748_v20  ;;  %v898_v27 = vld [vmem:[#allocation2] sm:$0xf]  ;;  %v729_v59 = vsel %vm727_vm3, %v691_v58, 0  ;;  %v749_v10 = vld [vmem:[#allocation3] sm:$0xf] }
  0xe1   : > { %v832_v25 = vpack.c.b16 %v831_v22, %v831_v22  ;;  %v906_v28 = vunpack.c.l.b16 %v898_v27  ;;  %738 = vmatpush.bf16.msrb.mxu0 %v729_v59  ;;  %v792_v11 = vunpack.c.l.b16 %v749_v10  ;;  %v1391_v10 = vld [vmem:[%s2118_s27] ss:$0 sm:$0xff] }
  0xe2   : > { %v757_v26 = vpack.c.b16 %v756_v23, %v756_v23 }
  0xe3   : > { %833 = vrot.lane.b32.xlu1 %v832_v25, %s1720_s16  ;;  %v907_v35 = vpack.c.b16 %v906_v28, %v906_v28  ;;  %v793_v12 = vpack.c.b16 %v792_v11, %v792_v11 }
  0xe4   : > { %758 = vrot.lane.b32.xlu0 %v757_v26, %s1721_s17 }
  0xe5   : > { %v689_v29 = vld [vmem:[#allocation4] sm:$0xf] }
  0xe6   : > { %v822_v30 = vld [vmem:[#allocation4] sm:$0xf]  ;;  %1238 = vmatmul.msk.bf16.vlgmr.msra.gmra.mxu3 %vm692_vm2, %v689_v29 }
  0xe7   : > { %v747_v31 = vld [vmem:[#allocation4] sm:$0xf]  ;;  %v826_v32 = vunpack.c.l.b16 %v822_v30 }
  0xe8   : > { %v751_v33 = vunpack.c.l.b16 %v747_v31  ;;  %v897_v37 = vld [vmem:[#allocation4] sm:$0xf] }
  0xe9   : > { %v827_v34 = vpack.c.b16 %v826_v32, %v826_v32  ;;  %v901_v38 = vunpack.c.l.b16 %v897_v37  ;;  %v824_v37 = vld [vmem:[#allocation3] sm:$0xf] }
  0xea   : > { %v752_v36 = vpack.c.b16 %v751_v33, %v751_v33 }
  0xeb   : > { %828 = vrot.lane.b32.xlu2 %v827_v34, %s1720_s16  ;;  %908 = vrot.lane.b32.xlu1 %v907_v35, %s1722_s22  ;;  %v902_v39 = vpack.c.b16 %v901_v38, %v901_v38  ;;  %v899_v34 = vld [vmem:[#allocation3] sm:$0xf]  ;;  %v867_v38 = vunpack.c.l.b16 %v824_v37 }
  0xec   : > { %753 = vrot.lane.b32.xlu0 %v752_v36, %s1721_s17  ;;  %v942_v35 = vunpack.c.l.b16 %v899_v34 }
  0xee   : > { %v943_v36 = vpack.c.b16 %v942_v35, %v942_v35 }
  0xf3   : > { %903 = vrot.lane.b32.xlu2 %v902_v39, %s1722_s22  ;;  %v868_v39 = vpack.c.b16 %v867_v38, %v867_v38 }
 0x145   : > { %v829_v45 = vpop.permute.xlu2 %828 }
 0x14d   : > { %v904_v51 = vpop.permute.xlu2 %903 }
 0x155   : > { %v834_v41 = vpop.permute.xlu1 %833 }
 0x156   : > { %v759_v42 = vpop.permute.xlu0 %758  ;;  %v839_v44 = vsel %vm692_vm2, %v834_v41, 0 }
 0x157   : > { %v764_v43 = vsel %vm692_vm2, %v759_v42, 0  ;;  %848 = vmatpush.bf16.xpose.msrb.mxu3 %v839_v44 }
 0x158   : > { %773 = vmatpush.bf16.xpose.msrb.mxu1 %v764_v43 }
 0x15d   : > { %v909_v46 = vpop.permute.xlu1 %908 }
 0x15e   : > { %v914_v47 = vsel %vm692_vm2, %v909_v46, 0  ;;  %v754_v48 = vpop.permute.xlu0 %753  ;;  %1242 = vmatmul.msk.bf16.vlgmr.msrb.gmra.mxu3 %vm692_vm2, %v829_v45 }
 0x15f   : > { %1240 = vmatmul.msk.bf16.vlgmr.msrb.gmra.mxu1 %vm692_vm2, %v754_v48 }
 0x160   : > { %923 = vmatpush.bf16.xpose.msra.mxu1 %v914_v47 }
 0x169   : > { %v708_v49 = vpop.f32.mrf.mxu3 }
 0x16a   : > { %v712_v50 = vsel %vm692_vm2, %v708_v49, -inf }
 0x16b   : > { %713 = vmax.xlane.f32.xlu1 %v712_v50 }
 0x16f   : > { %1244 = vmatmul.msk.bf16.vlgmr.msra.gmra.mxu1 %vm692_vm2, %v904_v51 }
 0x171   : > { %v710_v52 = vpop.f32.mrf.mxu3 }
 0x1dc   : > { %v775_v60 = vpop.f32.mrf.mxu1 }
 0x1dd   : > { %v779_v61 = vsel %vm692_vm2, %v775_v60, -inf }
 0x1de   : > { %780 = vmax.xlane.f32.xlu0 %v779_v61  ;;  %v714_v62 = vpop.xlane.xlu1 %713 }
 0x1df   : > { %v715_v63 = vsub.f32 %v708_v49, %v714_v62 }
 0x1e1   : > { %v850_v0 = vpop.f32.mrf.mxu3  ;;  %v716_v1 = vmul.f32 1.442695, %v715_v63 }
 0x1e2   : > { %v854_v9 = vsel %vm692_vm2, %v850_v0, -inf }
 0x1e3   : > { %1392 = vpow2.f32 %v716_v1 }
 0x1e4   : > { %v777_v2 = vpop.f32.mrf.mxu1 }
 0x1e9   : > { %v852_v3 = vpop.f32.mrf.mxu3  ;;  %v1393_v4 = vpop.eup %1392 }
 0x1ea   : > { %v718_v5 = vsel %vm692_vm2, %v1393_v4, 0.0 }
 0x1eb   : > { %719 = vadd.xlane.f32.xlu1 %v718_v5  ;;  %v1266_v5 = vld [vmem:[#allocation17 + $0x8] sm:$0xff] }
 0x1ec   : > { %v925_v6 = vpop.f32.mrf.mxu1  ;;  %1002 = vmatpush.bf16.msra.mxu3 %v1266_v5 }
 0x1ed   : > { %v929_v7 = vsel %vm692_vm2, %v925_v6, -inf }
 0x1ee   : > { %930 = vmax.xlane.f32.xlu2 %v929_v7 }
 0x1f4   : > { %v927_v8 = vpop.f32.mrf.mxu1 }
 0x1f6   : > { %855 = vmax.xlane.f32.xlu2 %v854_v9 }
 0x20e   : > { %794 = vrot.lane.b32.xlu2 %v793_v12, %s1721_s17 }
 0x251   : > { %v781_v13 = vpop.xlane.xlu0 %780 }
 0x252   : > { %v782_v14 = vsub.f32 %v775_v60, %v781_v13 }
 0x254   : > { %v783_v15 = vmul.f32 1.442695, %v782_v14 }
 0x256   : > { %1394 = vpow2.f32 %v783_v15 }
 0x25c   : > { %v1395_v16 = vpop.eup %1394 }
 0x25d   : > { %v785_v17 = vsel %vm692_vm2, %v1395_v16, 0.0 }
 0x25e   : > { %786 = vadd.xlane.f32.xlu0 %v785_v17  ;;  %v720_v18 = vpop.xlane.xlu1 %719 }
 0x25f   : > { %1396 = vrcp.f32 %v720_v18 }
 0x261   : > { %v931_v19 = vpop.xlane.xlu2 %930 }
 0x262   : > { %v932_v20 = vsub.f32 %v925_v6, %v931_v19  ;;  %v1265_v6 = vld [vmem:[#allocation17] sm:$0xff] }
 0x263   : > { %1003 = vmatpush.bf16.msra.mxu3 %v1265_v6 }
 0x264   : > { %v933_v21 = vmul.f32 1.442695, %v932_v20 }
 0x265   : > { %v1397_v22 = vpop.eup %1396 }
 0x266   : > { %1398 = vpow2.f32 %v933_v21  ;;  %v722_v23 = vmul.f32 %v1397_v22, %v1393_v4 }
 0x268   : > { %v723_v25 = vpack.c.bf16 %v722_v23, %v722_v23 }
 0x269   : > { %v856_v24 = vpop.xlane.xlu2 %855 }
 0x26a   : > { %v857_v26 = vsub.f32 %v850_v0, %v856_v24  ;;  %1239 = vmatmul.msk.bf16.vlgmr.msrb.gmra.mxu0 %vm692_vm2, %v723_v25 }
 0x26c   : > { %v1399_v27 = vpop.eup %1398  ;;  %v858_v28 = vmul.f32 1.442695, %v857_v26 }
 0x26d   : > { %v935_v29 = vsel %vm692_vm2, %v1399_v27, 0.0 }
 0x26e   : > { %1400 = vpow2.f32 %v858_v28  ;;  %936 = vadd.xlane.f32.xlu0 %v935_v29 }
 0x271   : > { %v795_v30 = vpop.permute.xlu2 %794 }
 0x272   : > { %v800_v31 = vsel %vm727_vm3, %v795_v30, 0 }
 0x273   : > { %809 = vmatpush.bf16.msrb.mxu2 %v800_v31 }
 0x274   : > { %v1401_v32 = vpop.eup %1400 }
 0x275   : > { %v860_v33 = vsel %vm692_vm2, %v1401_v32, 0.0 }
 0x276   : > { %861 = vadd.xlane.f32.xlu1 %v860_v33 }
 0x282   : > { %944 = vrot.lane.b32.xlu0 %v943_v36, %s1722_s22  ;;  %s1638_s22 = scalar_lea.hbm %s2073_s11, 16 }
 0x283   : > { %p1640_p11 = scmp.lt.s32.totalorder %s1638_s22, %s1634_s25 }
 0x285   : > { %p1641_p12 = por %p1640_p11, %p1639_p10 }
 0x287   : > { %p1642_p13 = pnand %p1641_p12, %p1637_p5 }
 0x28f   : > { %869 = vrot.lane.b32.xlu1 %v868_v39, %s1720_s16 }
 0x2d1   : > { %v787_v40 = vpop.xlane.xlu0 %786 }
 0x2d2   : > { %1402 = vrcp.f32 %v787_v40 }
 0x2d8   : > { %v1403_v41 = vpop.eup %1402 }
 0x2d9   : > { %v789_v42 = vmul.f32 %v1403_v41, %v1395_v16 }
 0x2db   : > { %v790_v43 = vpack.c.bf16 %v789_v42, %v789_v42 }
 0x2dd   : > { %1241 = vmatmul.msk.bf16.vlgmr.msrb.gmra.mxu2 %vm692_vm2, %v790_v43 }
 0x2e1   : > { %v937_v44 = vpop.xlane.xlu0 %936 }
 0x2e2   : > { %1404 = vrcp.f32 %v937_v44 }
 0x2e7   : > { %v740_v45 = vpop.f32.mrf.mxu0 }
 0x2e8   : > { %v744_v46 = vpack.c.bf16 %v740_v45, %v740_v45  ;;  %v1405_v47 = vpop.eup %1404 }
 0x2e9   : > { %v939_v49 = vmul.f32 %v1405_v47, %v1399_v27  ;;  %v862_v50 = vpop.xlane.xlu1 %861 }
 0x2ea   : > { %746 = vst.msk [vmem:[#allocation5] sm:$0xf] %vm745_vm4, %v744_v46  ;;  %1406 = vrcp.f32 %v862_v50 }
 0x2eb   : > { %v940_v53 = vpack.c.bf16 %v939_v49, %v939_v49 }
 0x2ef   : > { %v742_v48 = vpop.f32.mrf.mxu0 }
 0x2f0   : > { %v1407_v54 = vpop.eup %1406 }
 0x2f1   : > { %v864_v55 = vmul.f32 %v1407_v54, %v1401_v32 }
 0x2f3   : > { %v865_v58 = vpack.c.bf16 %v864_v55, %v864_v55 }
 0x2f4   : > { %v945_v51 = vpop.permute.xlu0 %944 }
 0x2f5   : > { %v950_v52 = vsel %vm727_vm3, %v945_v51, 0 }
 0x2f6   : > { %959 = vmatpush.bf16.msra.mxu2 %v950_v52 }
 0x2f9   : > { %1245 = vmatmul.msk.bf16.vlgmr.msra.gmra.mxu2 %vm692_vm2, %v940_v53 }
 0x301   : > { %v870_v56 = vpop.permute.xlu1 %869 }
 0x302   : > { %v875_v57 = vsel %vm727_vm3, %v870_v56, 0 }
 0x303   : > { %884 = vmatpush.bf16.msra.mxu0 %v875_v57 }
 0x306   : > { %1243 = vmatmul.msk.bf16.vlgmr.msra.gmra.mxu0 %vm692_vm2, %v865_v58 }
 0x360   : > { %v811_v59 = vpop.f32.mrf.mxu2 }
 0x361   : > { %v815_v60 = vpack.c.bf16 %v811_v59, %v811_v59 }
 0x363   : > { %817 = vrot.lane.b32.xlu2 %v815_v60, %s1723_s10 }
 0x368   : > { %v813_v61 = vpop.f32.mrf.mxu2 }
 0x37c   : > { %v961_v62 = vpop.f32.mrf.mxu2 }
 0x37d   : > { %v965_v63 = vpack.c.bf16 %v961_v62, %v961_v62 }
 0x37f   : > { %967 = vrot.lane.b32.xlu2 %v965_v63, %s1724_s12 }
 0x383   : > { %v886_v0 = vpop.f32.mrf.mxu0 }
 0x384   : > { %v890_v1 = vpack.c.bf16 %v886_v0, %v886_v0  ;;  %v963_v2 = vpop.f32.mrf.mxu2 }
 0x386   : > { %892 = vrot.lane.b32.xlu0 %v890_v1, %s1725_s28 }
 0x38b   : > { %v888_v3 = vpop.f32.mrf.mxu0 }
 0x3bd   : > { %v818_v4 = vpop.permute.xlu2 %817 }
 0x3be   : > { %821 = vst.msk [vmem:[#allocation5] sm:$0xf] %vm820_vm5, %v818_v4 }
 0x3d9   : > { %v968_v8 = vpop.permute.xlu2 %967 }
 0x3f8   : > { %v893_v7 = vpop.permute.xlu0 %892 }
 0x3f9   : > { %896 = vst.msk [vmem:[#allocation5] sm:$0xf] %vm895_vm6, %v893_v7 }
 0x3fa   : > { %971 = vst.msk [vmem:[#allocation5] sm:$0xf] %vm970_vm7, %v968_v8 }
 0x401   : > { %v972_v9 = vld [vmem:[#allocation5] sm:$0xf] }
 0x402   : > { %1254 = vmatmul.msk.bf16.vlgmr.msra.gmra.mxu3 %vm588_vm0, %v972_v9 }
 0x485   : > { %v1005_v11 = vpop.f32.mrf.mxu3 }
 0x486   : > { %v1006_v12 = vadd.f32 %v1391_v10, %v1005_v11 }
 0x488   : > { %1009 = vst [vmem:[%s561_s24] sm:$0xff] %v1006_v12 }
 0x489   : > { %1645 = shalt.err (!%p1642_p13)
}
 0x48a   : > { %1289 = dma.vmem_to_hbm [thread:$0]  (%p1874_p2), %s1025_s14, 128, %s1027_s29, %s1011_s23  }
 0x48d   : > { %v1007_v13 = vpop.f32.mrf.mxu3 }
 0x48e PF: > { %s2119_s15 = sld [smem:[#allocation24_spill]]  ;;  %p1315_p0 = pnand %p1195_p6, %p1881_p7 }
 0x48f   : > { %s2121_s12 = sld [smem:[#allocation26_spill]] }
 0x490   : > { %p1316_p4 = pneg %p1315_p0 }
 0x494   : > { %s1038_s28 = sand.u32 1, %s2119_s15  }
 0x495   : > { %s1039_s21 = scalar_lea.sflag [#allocation8], %s1038_s28 }
 0x496   : > { %1687 = dma.done.wait (%p1316_p4), %s1039_s21, 128  }
 0x497   : > { %1689 = vsyncadd (%p1316_p4), %s1039_s21, 4294967168  ;;  %s32_s22 = sadd.s32 1, %s2121_s12   ;;  %s2122_s26 = sld [smem:[#allocation29_spill]] }
 0x498   : > { %p29_p9 = scmp.ge.s32.totalorder %s32_s22, 4   ;;  %s2123_s20 = sld [smem:[#allocation25_spill]] }
 0x499   : > { %s2124_s21 = sld [smem:[#allocation27_spill]]  ;;  %s2125_s17 = smov %s1696_s18 }
 0x49a   : > { %s2126_s18 = smov %s1700_s19  ;;  %31 = sbr.rel (!%p29_p9) target bundleno = 18 (0x12), region = 153 }
 0x49d   : > { %s2127_s19 = smov %s2122_s26 }
 0x49f   :  { %1045 = vsyncpa [#allocation7], 1 }
 0x4a0   :  { %1047 = vsyncpa [#allocation7 + $0x1], 1 }
 0x4a1   :  { %1048 = vsyncpa [#allocation10], 1 }
 0x4a2   :  { %1050 = vsyncpa [#allocation10 + $0x1], 1 }
 0x4a3   :  { %1051 = vsyncpa [#allocation13], 1 }
 0x4a4   :  { %1052 = vsyncpa [#allocation16], 1 }
 0x4a5   :  { %1053 = vsyncpa [#allocation8], 1 }
 0x4a6   :  { %1055 = vsyncpa [#allocation8 + $0x1], 1 }

</bundles_post_ra>
